<compile_context>
chip_gen: v7x
topology: tpu7x:2x2x1
jax: 0.10.0
libtpu: 0.0.40
codegen_flags: <defaults>
</compile_context>

<pallas_src>
import jax
import jax.numpy as jnp
from jax import lax
from jax.experimental import pallas as pl
from jax.experimental.pallas import tpu as pltpu


def autopad(k, p=None, d=1):
    """Same as ultralytics autopad for int kernel sizes."""
    if d > 1:
        k = d * (k - 1) + 1
    if p is None:
        p = k // 2
    return p


def _matmul_bias_silu_kernel(pt_ref, wt_ref, bias_ref, o_ref):
    # pt_ref:   (K_pad, m_blk)  bf16 im2col patches in (K, M) layout (zero-padded)
    # wt_ref:   (c_out, K_pad)  bf16 BN-scale-folded conv weights (zero-padded)
    # bias_ref: (c_out, 1)      f32 folded BN bias
    # o_ref:    (c_out, m_blk)  f32 lane-dense output slab
    acc = jnp.dot(wt_ref[...], pt_ref[...], preferred_element_type=jnp.float32)
    y = acc + bias_ref[...]
    # SiLU: y * sigmoid(y). Reciprocal goes to the EUP slot (approx=True).
    sig = pl.reciprocal(1.0 + jnp.exp(-y), approx=True)
    o_ref[...] = (y * sig).astype(o_ref.dtype)


def conv_extra_forward(xs, w_hwio, gamma, beta, running_mean, running_var,
                       *, k=3, s=1, p=None, d=1, eps=1e-5):
    """Pallas implementation of ConvExtra.forward (inference mode).

    xs: tuple/list of arrays; only xs[1] (NCHW, 2 input channels) is used.
    Returns NCHW float32 output.
    """
    x_nchw = xs[1]
    n, c_in, h, w = x_nchw.shape
    assert c_in == 2, "ConvExtra's conv has in_channels fixed to 2"
    kh_, kw_, w_cin, c_out = w_hwio.shape
    assert kh_ == kw_ == k and w_cin == c_in

    pad = autopad(k, p, d)
    h_out = (h + 2 * pad - d * (k - 1) - 1) // s + 1
    w_out = (w + 2 * pad - d * (k - 1) - 1) // s + 1
    M = n * h_out * w_out          # folded batch*spatial -> lane axis of the matmul
    K = k * k * c_in               # im2col contraction depth

    LANE = 128
    K_pad = ((K + 7) // 8) * 8     # full sublane tiles (18 -> 24); zero rows are free

    # ---- glue: channel-leading layout, spatial pad, patches built as (K, M) ----
    # The wide spatial dims stay on the lane axis throughout; no NHWC-with-c=2
    # intermediates and no transpose of the expanded patch matrix.
    x_cn = jnp.transpose(x_nchw, (1, 0, 2, 3)).astype(jnp.bfloat16)   # (c_in, n, h, w)
    x_pad = jnp.pad(x_cn, ((0, 0), (0, 0), (pad, pad), (pad, pad)))

    taps = []
    for kh in range(k):
        for kw in range(k):
            tap = x_pad[:, :, kh * d: kh * d + (h_out - 1) * s + 1: s,
                        kw * d: kw * d + (w_out - 1) * s + 1: s]      # (c_in, n, h_out, w_out)
            taps.append(tap.reshape(c_in, M))
    # Row order (kh, kw, c_in) — matches w_hwio.reshape(K, c_out).
    patches_km = jnp.concatenate(taps, axis=0)                        # (K, M) bf16

    # ---- M tiling: lane-aligned blocks, VMEM-safe on all generations ----
    # Double-buffered footprint per block ~= 2*(K_pad*2B + c_out*4B)*m_blk
    # ~= 4.7 MiB at m_blk=32768, K_pad=24, c_out=8  -> fits v7x's 64 MiB VMEM easily.
    M_BLK_TARGET = 32768
    m_aligned = pl.cdiv(M, LANE) * LANE
    # Aim for >=4 grid steps (software pipelining + both v7x TensorCores) when M allows.
    m_blk = min(M_BLK_TARGET,
                max(LANE, pl.cdiv(max(m_aligned // 4, 1), LANE) * LANE))
    M_padded = pl.cdiv(M, m_blk) * m_blk
    grid = (M_padded // m_blk,)

    patches_km = jnp.pad(patches_km, ((0, K_pad - K), (0, M_padded - M)))

    # ---- BN folding: scale into weights; bias stays a tiny f32 stream ----
    scale = (gamma / jnp.sqrt(running_var + eps)).astype(jnp.float32)      # (c_out,)
    bias = (beta - running_mean * scale).astype(jnp.float32)               # (c_out,)
    w_flat = w_hwio.astype(jnp.float32).reshape(K, c_out) * scale[None, :]  # (K, c_out)
    w_t = jnp.pad(jnp.transpose(w_flat), ((0, 0), (0, K_pad - K)))          # (c_out, K_pad)
    w_t = w_t.astype(jnp.bfloat16)
    bias2d = bias.reshape(c_out, 1)

    cost = pl.CostEstimate(
        flops=2 * M_padded * K_pad * c_out + 4 * M_padded * c_out,
        transcendentals=M_padded * c_out,
        bytes_accessed=2 * (M_padded * K_pad + c_out * K_pad)
        + 4 * (c_out + M_padded * c_out),
    )

    out_cm = pl.pallas_call(
        _matmul_bias_silu_kernel,
        out_shape=jax.ShapeDtypeStruct((c_out, M_padded), jnp.float32),
        grid_spec=pl.GridSpec(
            grid=grid,
            in_specs=[
                pl.BlockSpec((K_pad, m_blk), lambda i: (0, i)),    # patches (K, M)
                pl.BlockSpec((c_out, K_pad), lambda i: (0, 0)),    # folded weights
                pl.BlockSpec((c_out, 1), lambda i: (0, 0)),        # folded bias
            ],
            out_specs=pl.BlockSpec((c_out, m_blk), lambda i: (0, i)),
        ),
        compiler_params=pltpu.CompilerParams(
            dimension_semantics=("parallel",)),
        cost_estimate=cost,
    )(patches_km, w_t, bias2d)

    # Drop M padding, then (c_out, n*h_out*w_out) -> NCHW.
    out_cm = out_cm[:, :M]
    return jnp.transpose(out_cm.reshape(c_out, n, h_out, w_out), (1, 0, 2, 3))


def conv_extra_reference(xs, w_hwio, gamma, beta, running_mean, running_var,
                         *, k=3, s=1, p=None, d=1, eps=1e-5):
    """Pure-JAX f32 reference (matches PyTorch inference-mode ConvExtra)."""
    x_nchw = xs[1]
    pad = autopad(k, p, d)
    x = jnp.transpose(x_nchw, (0, 2, 3, 1)).astype(jnp.float32)
    y = lax.conv_general_dilated(
        x, w_hwio.astype(jnp.float32), window_strides=(s, s),
        padding=[(pad, pad), (pad, pad)], rhs_dilation=(d, d),
        dimension_numbers=("NHWC", "HWIO", "NHWC"))
    scale = gamma / jnp.sqrt(running_var + eps)
    bias = beta - running_mean * scale
    y = y * scale + bias
    y = y * jax.nn.sigmoid(y)
    return jnp.transpose(y, (0, 3, 1, 2))


if __name__ == "__main__":
    # Module config: ConvExtra(c1=4, c2=8, k=3)  (conv in_channels is hard-coded to 2)
    c1, c2, k, s, d = 4, 8, 3, 1, 1
    n, h, w = 2, 16, 16

    key = jax.random.PRNGKey(0)
    k0, k1, k2 = jax.random.split(key, 3)

    # forward takes a sequence and uses x[1]; x[0] is an unused dummy of c1 channels.
    x0 = jax.random.normal(k0, (n, c1, h, w), jnp.float32)
    x1 = jax.random.normal(k1, (n, 2, h, w), jnp.float32)
    xs = (x0, x1)

    # Deterministic parameters.
    w_hwio = 0.1 * jax.random.normal(k2, (k, k, 2, c2), jnp.float32)  # Conv2d weight (HWIO)
    gamma = 1.0 + 0.05 * jnp.arange(c2, dtype=jnp.float32)            # bn.weight
    beta = 0.02 * jnp.arange(c2, dtype=jnp.float32) - 0.05            # bn.bias
    running_mean = 0.01 * jnp.arange(c2, dtype=jnp.float32)           # bn.running_mean
    running_var = 1.0 + 0.1 * jnp.arange(c2, dtype=jnp.float32)       # bn.running_var

    out = conv_extra_forward(xs, w_hwio, gamma, beta, running_mean, running_var,
                             k=k, s=s, d=d)
    out = jax.block_until_ready(out)

    ref = conv_extra_reference(xs, w_hwio, gamma, beta, running_mean, running_var,
                               k=k, s=s, d=d)
    assert out.shape == (n, c2, h, w), out.shape
    # bf16 streaming operands + approx reciprocal -> looser tolerance than pure f32.
    max_err = float(jnp.max(jnp.abs(out - ref)))
    assert jnp.allclose(out, ref, atol=3e-2, rtol=3e-2), max_err

    print("KERNEL_OK")
</pallas_src>

<mosaic_0001>
module attributes {stable_mosaic.version = 11 : i64} {
  func.func @_matmul_bias_silu_kernel(%arg0: i32, %arg1: memref<24x128xbf16, #tpu.memory_space<vmem>>, %arg2: memref<8x24xbf16, #tpu.memory_space<vmem>>, %arg3: memref<8x1xf32, #tpu.memory_space<vmem>>, %arg4: memref<8x128xf32, #tpu.memory_space<vmem>>) attributes {dimension_semantics = [#tpu.dimension_semantics<parallel>], iteration_bounds = array<i64: 4>, scalar_prefetch = 0 : i64, scratch_operands = 0 : i64, tpu.core_type = #tpu.core_type<tc>, window_params = [{transform_indices = @transform_0, window_bounds = array<i64: 24, 128>}, {pipeline_mode = #tpu.pipeline_mode<synchronous>, transform_indices = @transform_1, window_bounds = array<i64: 8, 24>}, {pipeline_mode = #tpu.pipeline_mode<synchronous>, transform_indices = @transform_2, window_bounds = array<i64: 8, 1>}, {transform_indices = @transform_3, window_bounds = array<i64: 8, 128>}]} {
    %c0 = arith.constant 0 : index
    %c0_0 = arith.constant 0 : index
    %0 = vector.load %arg2[%c0, %c0_0] : memref<8x24xbf16, #tpu.memory_space<vmem>>, vector<8x24xbf16>
    %c0_1 = arith.constant 0 : index
    %c0_2 = arith.constant 0 : index
    %1 = vector.load %arg1[%c0_1, %c0_2] : memref<24x128xbf16, #tpu.memory_space<vmem>>, vector<24x128xbf16>
    %cst = arith.constant dense<0.000000e+00> : vector<8x128xf32>
    %2 = tpu.matmul %0, %1, %cst {dimension_numbers = #tpu.dot_dimension_numbers<[1], [0], [0], [1], [0, 0, 1, 1], [], []>} : vector<8x24xbf16>, vector<24x128xbf16>, vector<8x128xf32> -> vector<8x128xf32>
    %c0_3 = arith.constant 0 : index
    %c0_4 = arith.constant 0 : index
    %3 = vector.load %arg3[%c0_3, %c0_4] : memref<8x1xf32, #tpu.memory_space<vmem>>, vector<8x1xf32>
    %4 = vector.broadcast %3 : vector<8x1xf32> to vector<8x128xf32>
    %5 = arith.addf %2, %4 : vector<8x128xf32>
    %cst_5 = arith.constant 0.000000e+00 : f32
    %6 = vector.broadcast %cst_5 : f32 to vector<8x128xf32>
    %7 = arith.subf %6, %5 : vector<8x128xf32>
    %8 = math.exp %7 : vector<8x128xf32>
    %cst_6 = arith.constant 1.000000e+00 : f32
    %9 = vector.broadcast %cst_6 : f32 to vector<8x128xf32>
    %10 = arith.addf %9, %8 : vector<8x128xf32>
    %11 = tpu.reciprocal %10 {approx = true} : vector<8x128xf32> -> vector<8x128xf32>
    %12 = arith.mulf %5, %11 : vector<8x128xf32>
    %c0_7 = arith.constant 0 : index
    %c0_8 = arith.constant 0 : index
    %13 = vector.load %arg4[%c0_7, %c0_8] : memref<8x128xf32, #tpu.memory_space<vmem>>, vector<8x128xf32>
    tpu.vector_store %arg4[%c0_7, %c0_8], %12 {strides = array<i32>} : memref<8x128xf32, #tpu.memory_space<vmem>>, vector<8x128xf32>,
    return
  }
  func.func @transform_0(%arg0: i32) -> (i32, i32) {
    %c0_i32 = arith.constant 0 : i32
    %c0_i32_0 = arith.constant 0 : i32
    return %c0_i32, %arg0 : i32, i32
  }
  func.func @transform_1(%arg0: i32) -> (i32, i32) {
    %c0_i32 = arith.constant 0 : i32
    %c0_i32_0 = arith.constant 0 : i32
    %c0_i32_1 = arith.constant 0 : i32
    return %c0_i32, %c0_i32_0 : i32, i32
  }
  func.func @transform_2(%arg0: i32) -> (i32, i32) {
    %c0_i32 = arith.constant 0 : i32
    %c0_i32_0 = arith.constant 0 : i32
    %c0_i32_1 = arith.constant 0 : i32
    return %c0_i32, %c0_i32_0 : i32, i32
  }
  func.func @transform_3(%arg0: i32) -> (i32, i32) {
    %c0_i32 = arith.constant 0 : i32
    %c0_i32_0 = arith.constant 0 : i32
    return %c0_i32, %arg0 : i32, i32
  }
}

</mosaic_0001>

<bundles_post_ra>
// kernel: tpu_custom_call.1
= control target key start
LH: loop header
LB: loop body
LE: loop exit
PB: predicated region body
PF: predicated region fallthrough
CT: control target
= control target key end

     0   :  { %8 = vsyncpa [#allocation3], 0  ;;  %s719_s0 = inlined_call_operand.hbm [shape: bf16[24,512], index: 0, kind: input, shape index: {}]   ;;  %s720_s1 = inlined_call_operand.vmem [shape: bf16[8,24], index: 1, kind: input, shape index: {}]   ;;  %s721_s2 = inlined_call_operand.vmem [shape: f32[8,1], index: 2, kind: input, shape index: {}]   ;;  %s722_s3 = inlined_call_operand.hbm [shape: f32[8,512], index: 3, kind: output, shape index: {}]  }
   0x1   :  { %10 = vsyncpa [#allocation3 + $0x1], 0 }
   0x2   :  { %11 = vsyncpa [#allocation4], 0 }
   0x3   :  { %13 = vsyncpa [#allocation4 + $0x1], 0  ;;  %s558_s12 = smov 0   ;;  %s560_s13 = smov 0  }
   0x4   :  { %s562_s14 = smov 0   ;;  %s564_s15 = smov 0  }
   0x5 LB: > { %s579_s16 = sadd.s32 4294967295, %s528_s15   ;;  %s347_s17 = sadd.s32 4294967294, %s528_s15   ;;  %s528_s15 = sphi %s564_s15, %s734_s15   ;;  %s524_s14 = sphi %s562_s14, %s733_s14   ;;  %s520_s13 = sphi %s560_s13, %s732_s13   ;;  %s516_s12 = sphi %s558_s12, %s731_s12  }
   0x6   : > { %s583_s18 = sadd.s32 1, %s528_s15   ;;  %s26_s19 = sadd.s32 1, %s524_s14 }
   0x7   : > { %s23_s20 = ssub.s32 %s528_s15, %s583_s18  ;;  %p33_p0 = scmp.ne.s32.totalorder %s524_s14, %s520_s13 }
   0x8   : > { %p24_p1 = scmp.eq.s32.totalorder %s23_s20, 0  ;;  %p34_p2 = scmp.eq.s32.totalorder %s528_s15, 0 }
   0x9   : > { %p39_p3 = scmp.ne.s32.totalorder %s520_s13, %s516_s12  ;;  %p40_p4 = scmp.eq.s32.totalorder %s579_s16, 0 }
   0xa   : > { %s595_s21 = scalar_select %p24_p1, %s524_s14, %s26_s19  }
   0xb   : > { %p35_p5 = por %p34_p2, %p33_p0  ;;  %p597_p6 = por %p40_p4, %p39_p3 }
   0xc   : > { %p105_p7 = scmp.eq.s32.totalorder %s579_s16, 3  ;;  %p111_p8 = scmp.eq.s32.totalorder %s347_s17, 3 }
   0xd   : > { %p385_p9 = scmp.lt.s32.totalorder %s528_s15, 4  ;;  %s137_s25 = sand.u32 1, %s524_s14  }
   0xe   : > { %p603_p10 = por %p105_p7, %p33_p0  ;;  %p607_p11 = por %p111_p8, %p39_p3 }
   0xf   : > { %s350_s26 = sshll.u32 %s528_s15, 6  ;;  %s371_s27 = smul.u32 12, %s137_s25 }
  0x10   : > { %s725_s23 = scalar_select %p603_p10, 1, 0 }
  0x11   : > { %s726_s24 = scalar_select %p607_p11, 1, 0 }
  0x12   : > { %s616_s30 = scalar_lea.hbm %s719_s0, %s350_s26  ;;  %p618_p12 = pnand %p385_p9, %p35_p5 }
  0x13   : > { %s141_s5 = scalar_lea.vmem [#allocation2], %s371_s27  ;;  %s625_s7 = scalar_lea.sflag [#allocation3], %s137_s25 }
  0x14   : > { %s147_s6 = sshll.u32 %s141_s5, 4  ;;  %s432_s8 = scalar_lea.hbm %s616_s30, 192  ;;  %s622_s6 = int_to_ptr.vmem [resolvable:$true] %s147_s6 }
  0x15   : > { %p433_p0 = scmp.ne.s32.totalorder %s616_s30, %s432_s8  ;;  %p434_p1 = pneg %p618_p12 }
  0x16   : > { %s437_s11 = scalar_lea.hbm %s719_s0, 768  ;;  %p438_p4 = scmp.lt.u32.totalorder %s616_s30, %s719_s0 }
  0x17   : > { %p435_p2 = pnand %p434_p1, %p433_p0  ;;  %p439_p5 = scmp.lt.u32.totalorder %s437_s11, %s432_s8 }
  0x18   : > { %p441_p8 = scmp.lt.u32.totalorder %s432_s8, %s616_s30 }
  0x19   : > { %p436_p3 = pneg %p435_p2  ;;  %p440_p7 = por %p439_p5, %p438_p4 }
  0x1b   : > { %p442_p9 = por %p441_p8, %p440_p7 }
  0x1d   : > { %p443_p13 = pnand %p442_p9, %p436_p3 }
  0x1f   : > { %446 = shalt.err (!%p443_p13)
}
  0x20   : > { %s447_s20 = scalar_lea.vmem %s622_s6, 192  ;;  %s530_s25 = smov [#allocation2]  }
  0x21   : > { %p448_p0 = scmp.ne.s32.totalorder %s622_s6, %s447_s20  ;;  %s452_s26 = sshll.u32 %s530_s25, 4  ;;  %s453_s26 = int_to_ptr.vmem [resolvable:$false] %s452_s26 }
  0x22   : > { %s454_s27 = scalar_lea.vmem %s453_s26, 384  ;;  %p455_p10 = scmp.lt.s32.totalorder %s622_s6, %s453_s26 }
  0x23   : > { %p450_p2 = pnand %p448_p0, %p434_p1  ;;  %p456_p4 = scmp.lt.s32.totalorder %s454_s27, %s447_s20 }
  0x25   : > { %p451_p11 = pneg %p450_p2  ;;  %p457_p5 = por %p456_p4, %p455_p10 }
  0x27   : > { %p458_p7 = pnand %p457_p5, %p451_p11 }
  0x29   : > { %461 = shalt.err (!%p458_p7)
}
  0x2a   : > { %s531_s28 = smov 256   ;;  %s532_s29 = smov 64  }
  0x2b   : > { %s533_s5 = smov 4   ;;  %p155_p13 = scmp.lt.s32.totalorder %s528_s15, 5 }
  0x2c   : > { %380 = dma.hbm_to_vmem [thread:$0]  (!%p618_p12), %s616_s30, 192, %s622_s6, %s625_s7, %s531_s28, %s532_s29, %s533_s5  }
  0x2d   : > { %p728_p1 = scmp.ge.s32.totalorder %s528_s15, 1 }
  0x2f   : > { %p156_p3 = pnand %p728_p1, %p155_p13 }
  0x30   : > { %s657_s8 = sand.u32 (!%p156_p3), 1, %s520_s13  }
  0x31   : > { %159 = sbr.rel (%p156_p3) target bundleno = 324 (0x144), region = 32  ;;  %s162_s10 = scalar_lea.sflag (!%p156_p3), [#allocation3], %s657_s8 }
  0x32   : > { %s372_s9 = smul.u32 (!%p156_p3), 12, %s657_s8 }
  0x34   : > { %s165_s11 = scalar_lea.vmem (!%p156_p3), [#allocation2], %s372_s9 }
  0x38   : > { %507 = dma.done.wait (%p597_p6), %s162_s10, 192  }
  0x39   : > { %509 = vsyncadd (%p597_p6), %s162_s10, 4294967104  ;;  %v534_v0 = vmov 0.0   ;;  %vm535_vm0 = vmmov 0   ;;  %v536_v1 = vmov 0   ;;  %v426_v2 = vld [vmem:[%s165_s11] sm:$0xff]   ;;  %vm212_vm1 = vcmask 1043456  }
  0x3a   : > { %363 = vmatprep.subr.bf16.mxu0 %v534_v0  ;;  %367 = vmatprep.mubr.msk.bf16.mxu0 %vm535_vm0, %v534_v0  ;;  %v427_v3 = vld [vmem:[%s165_s11 + $0x8] ss:$0 sps:$4 sm:$0xff]   ;;  %v193_v4 = vld [vmem:[%s721_s2] sm:$0xff]  ;;  %vm208_vm2 = vcmask 195584   ;;  %s352_s7 = sshll.u32 %s657_s8, 3  ;;  %s357_s17 = sshll.u32 %s579_s16, 7 }
  0x3b   : > { %425 = vset.pattern.permute.xlu0 %v536_v1  ;;  %364 = vmatpush3.bf16.msra.mxu0 %v426_v2  ;;  %v214_v5 = vsel %vm212_vm1, %v427_v3, 0  ;;  %v189_v6 = vld [vmem:[%s720_s1] sm:$0xf]  ;;  %s187_s19 = scalar_lea.vmem [#allocation5], %s352_s7  ;;  %s676_s27 = scalar_lea.hbm %s722_s3, %s357_s17 }
  0x3c   : > { %365 = vmatprep.subr.bf16.mxu0 %v534_v0  ;;  %196 = vperm.xlu0 %425, %v193_v4   ;;  %s277_s20 = sshll.u32 %s187_s19, 4  ;;  %s264_s28 = scalar_lea.sflag [#allocation4], %s657_s8  ;;  %s678_s20 = int_to_ptr.vmem [resolvable:$true] %s277_s20 }
  0x3d   : > { %s462_s29 = scalar_lea.vmem %s678_s20, 128  ;;  %p729_p10 = scmp.ne.s32.totalorder %s725_s23, 0 }
  0x3e   : > { %p463_p6 = scmp.ne.s32.totalorder %s678_s20, %s462_s29  ;;  %s537_s16 = smov [#allocation5]  }
  0x3f   : > { %366 = vmatpush3.bf16.msra.mxu0 %v214_v5  ;;  %s466_s5 = sshll.u32 %s537_s16, 4  ;;  %s467_s5 = int_to_ptr.vmem [resolvable:$false] %s466_s5 }
  0x40   : > { %p464_p11 = pnand %p463_p6, %p729_p10  ;;  %s468_s9 = scalar_lea.vmem %s467_s5, 256 }
  0x41   : > { %p469_p8 = scmp.lt.s32.totalorder %s678_s20, %s467_s5  ;;  %p470_p9 = scmp.lt.s32.totalorder %s468_s9, %s462_s29 }
  0x42   : > { %368 = vmatmul.mubr.msk.bf16.vlgmr.msra.gmra.mrb[0].mxu0 %vm208_vm2, %v189_v6  ;;  %p465_p12 = pneg %p464_p11 }
  0x43   : > { %p471_p0 = por %p470_p9, %p469_p8 }
  0x45   : > { %p472_p2 = pnand %p471_p0, %p465_p12 }
  0xbb   : > { %v197_v7 = vpop.permute.xlu0 %196 }
 0x115   : > { %v250_v8 = vpop.f32.mrb[0].mxu0 }
 0x116   : > { %v251_v9 = vadd.f32 %v250_v8, %v197_v7  ;;  %v369_v10 = vpop.f32.mrb[1].mxu0 }
 0x117   : > { %v253_v11 = vpop.f32.mrb[2].mxu0 }
 0x118   : > { %v256_v12 = vsub.f32 0.0, %v251_v9  ;;  %v370_v13 = vpop.f32.mrb[3].mxu0 }
 0x11a   : > { %v257_v14 = vmul.f32 1.442695, %v256_v12 }
 0x11c   : > { %428 = vpow2.f32 %v257_v14 }
 0x126   : > { %v429_v15 = vpop.eup %428 }
 0x127   : > { %v259_v16 = vadd.f32 1.0, %v429_v15 }
 0x129   : > { %430 = vrcp.f32 %v259_v16 }
 0x133   : > { %v431_v17 = vpop.eup %430 }
 0x134   : > { %v261_v18 = vmul.f32 %v431_v17, %v251_v9 }
 0x136   : > { %262 = vst [vmem:[%s187_s19] sm:$0xff] %v261_v18 }
 0x137   : > { %475 = shalt.err (!%p472_p2)
}
 0x138   : > { %s476_s8 = scalar_lea.hbm %s676_s27, 128  ;;  %s480_s30 = scalar_lea.hbm %s722_s3, 512 }
 0x139   : > { %p477_p4 = scmp.ne.s32.totalorder %s676_s27, %s476_s8  ;;  %p481_p13 = scmp.lt.u32.totalorder %s676_s27, %s722_s3 }
 0x13a   : > { %p482_p1 = scmp.lt.u32.totalorder %s480_s30, %s476_s8  ;;  %p484_p6 = scmp.lt.u32.totalorder %s476_s8, %s676_s27 }
 0x13b   : > { %p478_p5 = pnand %p477_p4, %p729_p10 }
 0x13c   : > { %p483_p3 = por %p482_p1, %p481_p13 }
 0x13d   : > { %p479_p7 = pneg %p478_p5 }
 0x13e   : > { %p485_p11 = por %p484_p6, %p483_p3 }
 0x140   : > { %p486_p12 = pnand %p485_p11, %p479_p7 }
 0x142   : > { %489 = shalt.err (!%p486_p12)
}
 0x143   : > { %375 = dma.vmem_to_hbm [thread:$0]  (%p729_p10), %s678_s20, 128, %s676_s27, %s264_s28  }
 0x144 PF: > { %p386_p8 = scmp.ge.s32.totalorder %s528_s15, 2  ;;  %s289_s6 = sand.u32 1, %s516_s12  }
 0x145   : > { %p730_p9 = scmp.ne.s32.totalorder %s726_s24, 0  ;;  %s290_s7 = scalar_lea.sflag [#allocation4], %s289_s6 }
 0x147   : > { %p382_p0 = pnand %p386_p8, %p730_p9 }
 0x149   : > { %511 = dma.done.wait (!%p382_p0), %s290_s7, 128  }
 0x14a   : > { %513 = vsyncadd (!%p382_p0), %s290_s7, 4294967168  ;;  %p16_p2 = scmp.ge.s32.totalorder %s583_s18, 6   ;;  %s731_s12 = smov %s520_s13 }
 0x14b   : > { %s732_s13 = smov %s524_s14  ;;  %s733_s14 = smov %s595_s21 }
 0x14c   : > { %s734_s15 = smov %s583_s18  ;;  %18 = sbr.rel (!%p16_p2) target bundleno = 5 (0x5), region = 77 }
 0x153   :  { %295 = vsyncpa [#allocation3], 1 }
 0x154   :  { %297 = vsyncpa [#allocation3 + $0x1], 1 }
 0x155   :  { %298 = vsyncpa [#allocation4], 1 }
 0x156   :  { %300 = vsyncpa [#allocation4 + $0x1], 1 }

</bundles_post_ra>
